<compile_context>
chip_gen: v5e
topology: v5e:2x2
jax: 0.10.0
libtpu: 0.0.40
codegen_flags: <defaults>
</compile_context>

<pallas_src>
import jax
import jax.numpy as jnp
from jax.experimental import pallas as pl
from jax.experimental.pallas import tpu as pltpu

_HIDDEN = 8        # logical hidden width of the torch module
_HIDDEN_PAD = 128  # lane-padded hidden width used for the first matmul
_SUB = 256         # rows per in-kernel sub-chunk (multiple of 128 -> lane-dense rows)


def _round_up(a, b):
    return (a + b - 1) // b * b


def _vmem_budget_bytes():
    # Generation-aware budget: ~75% of physical VMEM (48 MiB on v7x, 96 MiB on
    # v5e/v6e).  Conservative 64 MiB fallback if the query is unavailable.
    try:
        cap = int(pltpu.get_tpu_info().vmem_capacity_bytes)
    except Exception:
        cap = 64 * 1024 * 1024
    return cap * 3 // 4


def _normalize_tile(tile, n):
    tile = max(8, min(int(tile), _round_up(n, 8)))
    if tile >= _SUB:
        tile = (tile // _SUB) * _SUB
        return tile, _SUB
    tile = (tile // 8) * 8
    return tile, tile


def _pick_tile(n, d, itemsize, budget):
    d_pad = _round_up(d, 128)
    # ~4 MiB of real x data per block (1-4 MiB blocks measured at 85%+ of HBM
    # roofline), capped so double-buffered lane-padded x blocks + weights +
    # temporaries stay inside the VMEM budget.
    target = max(8, (4 * 1024 * 1024) // (d * itemsize))
    reserve = 2 * d_pad * _HIDDEN_PAD * 4 + 6 * 1024 * 1024
    cap = max(8, (budget - reserve) // (2 * d_pad * itemsize))
    tile = min(target, cap, _round_up(n, 8))
    # If one tile would cover a sizeable batch, split it so the "parallel"
    # grid axis can shard across both v7x TensorCores (no-op cost elsewhere).
    if tile >= n and n * d * itemsize >= (2 << 20):
        tile = min(tile, _round_up(-(-n // 2), _SUB))
    return _normalize_tile(tile, n)


def _predict_kernel(x_ref, w1_ref, b1_ref, w2_ref, b2_ref, o_ref):
    # x_ref : (TILE, D)        row tile of the batch (trailing partial block may
    #                          contain garbage OOB rows; discarded in wrapper)
    # w1_ref: (D, 128)         first Linear weight, zero-padded 8 -> 128
    # b1_ref: (1, 128)         first Linear bias, zero-padded
    # w2_ref: (1, 8)           second Linear weight, un-padded row
    # b2_ref: (1,)   SMEM      second Linear bias (scalar)
    # o_ref : (1, N_SUB, SUB)  lane-dense output rows, one per sub-chunk
    n_sub = o_ref.shape[1]
    sub = o_ref.shape[2]
    w1 = w1_ref[...]
    b1 = b1_ref[...]
    w2 = w2_ref[...]
    b2 = b2_ref[0]

    def body(c, carry):
        r0 = pl.multiple_of(c * sub, _SUB) if sub == _SUB else c * sub
        x_c = x_ref[pl.ds(r0, sub), :]                               # (SUB, D)
        h = jnp.dot(x_c, w1, preferred_element_type=jnp.float32)     # (SUB, 128)
        h = jnp.maximum(h + b1, 0.0)                                 # bias + ReLU
        # Dropout(drop_ratio=0) is the identity -> nothing to do.
        # Second Linear, contracting over only the 8 real hidden lanes so the
        # implied RHS relayout is (SUB, 8) -> (8, SUB), not a full 128-lane
        # transpose of h; the result is a lane-dense (1, SUB) row.
        row = jax.lax.dot_general(
            w2, h[:, :_HIDDEN],
            dimension_numbers=(((1,), (1,)), ((), ())),
            preferred_element_type=jnp.float32)                      # (1, SUB)
        o_ref[:, pl.ds(c, 1), :] = (row + b2).astype(o_ref.dtype)[None]
        return carry

    jax.lax.fori_loop(0, n_sub, body, 0)


def predict_layer(x, w1, b1, w2, b2, *, tile_rows=None):
    """Pallas implementation of PredictLayer.forward.

    x : (N, D)
    w1: (D, 8), b1: (8,)   -- first Linear (input-major storage)
    w2: (8, 1), b2: (1,)   -- second Linear
    returns (N, 1) in x.dtype
    """
    N, D = x.shape
    itemsize = jnp.dtype(x.dtype).itemsize
    budget = _vmem_budget_bytes()
    if tile_rows is None:
        tile, sub = _pick_tile(N, D, itemsize, budget)
    else:
        tile, sub = _normalize_tile(tile_rows, N)   # override (mainly for tests)
    n_sub = tile // sub
    grid_m = -(-N // tile)          # cdiv; trailing block may be partial (no pad)

    # Zero-pad the first layer's hidden dim 8 -> 128 once (KB-sized weights).
    w1p = jnp.zeros((D, _HIDDEN_PAD), w1.dtype).at[:, :_HIDDEN].set(w1)
    b1p = jnp.zeros((1, _HIDDEN_PAD), b1.dtype).at[0, :_HIDDEN].set(b1)
    w2r = w2.reshape(1, _HIDDEN)    # second layer kept un-padded (8 lanes)
    b2r = b2.reshape(1)

    # VMEM estimate: double-buffered lane-padded x blocks + output blocks +
    # weight blocks + per-sub-chunk h temporaries; clamp to the physical budget.
    d_pad = _round_up(D, 128)
    est_vmem = (2 * tile * d_pad * itemsize
                + 2 * n_sub * sub * itemsize
                + 2 * (D * _HIDDEN_PAD + _HIDDEN_PAD + _HIDDEN) * 4
                + 6 * sub * _HIDDEN_PAD * 4)
    vmem_limit = int(min(budget, max(32 * 1024 * 1024, est_vmem + (8 << 20))))

    # Logical flops (hidden = 8, not the padded 128): firmly memory-bound.
    cost = pl.CostEstimate(
        flops=2 * N * D * _HIDDEN + 2 * N * _HIDDEN,
        transcendentals=0,
        bytes_accessed=N * D * itemsize + N * itemsize
        + (D * _HIDDEN + 2 * _HIDDEN + 1) * 4,
    )

    # TODO(synk): pipeline_mode=pl.Buffered(1) on the constant-index weight
    # blocks would drop their redundant second VMEM buffer (only matters for
    # very large D); omitted to stay on the known-good lowering path.
    # TODO(synk): for extremely large D (2*tile_min*D*4 > VMEM budget) a
    # K-tiled (D-split) variant with pre-ReLU accumulation is required.
    out_tiles = pl.pallas_call(
        _predict_kernel,
        out_shape=jax.ShapeDtypeStruct((grid_m, n_sub, sub), x.dtype),
        grid=(grid_m,),
        in_specs=[
            pl.BlockSpec((tile, D), lambda i: (i, 0)),              # x row tile
            pl.BlockSpec((D, _HIDDEN_PAD), lambda i: (0, 0)),       # w1 (padded)
            pl.BlockSpec((1, _HIDDEN_PAD), lambda i: (0, 0)),       # b1 (padded)
            pl.BlockSpec((1, _HIDDEN), lambda i: (0, 0)),           # w2 row (8)
            pl.BlockSpec(memory_space=pltpu.MemorySpace.SMEM),      # b2 scalar
        ],
        out_specs=pl.BlockSpec((1, n_sub, sub), lambda i: (i, 0, 0)),
        compiler_params=pltpu.CompilerParams(
            dimension_semantics=("parallel",),
            vmem_limit_bytes=vmem_limit,
        ),
        cost_estimate=cost,
    )(x, w1p, b1p, w2r, b2r)

    # (grid_m, n_sub, sub) flattens in batch-row order -> (N, 1), dropping the
    # rows produced from the out-of-bounds tail of the last (partial) tile.
    return out_tiles.reshape(-1, 1)[:N]


def _reference(x, w1, b1, w2, b2):
    h = jnp.maximum(x @ w1 + b1.reshape(1, -1), 0.0)
    return h @ w2 + b2.reshape(1, -1)


if __name__ == "__main__":
    key = jax.random.PRNGKey(0)
    N, D = 16, 32  # small shapes: batch=16, embedding_dim=32
    kx, k1, k2, k3, k4 = jax.random.split(key, 5)

    x = jax.random.normal(kx, (N, D), dtype=jnp.float32)
    lim1 = 1.0 / jnp.sqrt(jnp.float32(D))
    w1 = jax.random.uniform(k1, (D, _HIDDEN), jnp.float32, -lim1, lim1)
    b1 = jax.random.uniform(k2, (_HIDDEN,), jnp.float32, -lim1, lim1)
    lim2 = 1.0 / jnp.sqrt(jnp.float32(_HIDDEN))
    w2 = jax.random.uniform(k3, (_HIDDEN, 1), jnp.float32, -lim2, lim2)
    b2 = jax.random.uniform(k4, (1,), jnp.float32, -lim2, lim2)

    # 1) Single-tile path (automatic byte-targeted tile sizing).
    out = jax.block_until_ready(predict_layer(x, w1, b1, w2, b2))
    ref = _reference(x, w1, b1, w2, b2)
    assert out.shape == (N, 1)
    assert jnp.allclose(out, ref, atol=1e-5, rtol=1e-5), "mismatch (single tile)"

    # 2) Multi-tile path with a partial (out-of-bounds-read) trailing block.
    N2 = 40
    x2 = jax.random.normal(jax.random.PRNGKey(1), (N2, D), dtype=jnp.float32)
    out2 = jax.block_until_ready(predict_layer(x2, w1, b1, w2, b2, tile_rows=16))
    ref2 = _reference(x2, w1, b1, w2, b2)
    assert out2.shape == (N2, 1)
    assert jnp.allclose(out2, ref2, atol=1e-5, rtol=1e-5), "mismatch (multi tile)"

    # 3) In-kernel sub-chunk loop (tile > 256) + partial trailing tile.
    N3 = 1000
    x3 = jax.random.normal(jax.random.PRNGKey(2), (N3, D), dtype=jnp.float32)
    out3 = jax.block_until_ready(predict_layer(x3, w1, b1, w2, b2, tile_rows=512))
    ref3 = _reference(x3, w1, b1, w2, b2)
    assert out3.shape == (N3, 1)
    assert jnp.allclose(out3, ref3, atol=1e-5, rtol=1e-5), "mismatch (sub-chunk)"

    print("KERNEL_OK")
</pallas_src>

<mosaic_0001>
module attributes {stable_mosaic.version = 11 : i64} {
  func.func @_predict_kernel(%arg0: i32, %arg1: memref<16x32xf32, #tpu.memory_space<vmem>>, %arg2: memref<32x128xf32, #tpu.memory_space<vmem>>, %arg3: memref<1x128xf32, #tpu.memory_space<vmem>>, %arg4: memref<1x8xf32, #tpu.memory_space<vmem>>, %arg5: memref<1xf32, #tpu.memory_space<smem>>, %arg6: memref<1x1x16xf32, #tpu.memory_space<vmem>>) attributes {dimension_semantics = [#tpu.dimension_semantics<parallel>], iteration_bounds = array<i64: 1>, scalar_prefetch = 0 : i64, scratch_operands = 0 : i64, tpu.core_type = #tpu.core_type<tc>, window_params = [{transform_indices = @transform_0, window_bounds = array<i64: 16, 32>}, {pipeline_mode = #tpu.pipeline_mode<synchronous>, transform_indices = @transform_1, window_bounds = array<i64: 32, 128>}, {pipeline_mode = #tpu.pipeline_mode<synchronous>, transform_indices = @transform_2, window_bounds = array<i64: 1, 128>}, {pipeline_mode = #tpu.pipeline_mode<synchronous>, transform_indices = @transform_3, window_bounds = array<i64: 1, 8>}, {transform_indices = @transform_4, window_bounds = array<i64: 1>}, {transform_indices = @transform_5, window_bounds = array<i64: 1, 1, 16>}]} {
    %c0 = arith.constant 0 : index
    %c0_0 = arith.constant 0 : index
    %0 = vector.load %arg2[%c0, %c0_0] : memref<32x128xf32, #tpu.memory_space<vmem>>, vector<32x128xf32>
    %c0_1 = arith.constant 0 : index
    %c0_2 = arith.constant 0 : index
    %1 = vector.load %arg3[%c0_1, %c0_2] : memref<1x128xf32, #tpu.memory_space<vmem>>, vector<1x128xf32>
    %c0_3 = arith.constant 0 : index
    %c0_4 = arith.constant 0 : index
    %2 = vector.load %arg4[%c0_3, %c0_4] : memref<1x8xf32, #tpu.memory_space<vmem>>, vector<1x8xf32>
    %c0_5 = arith.constant 0 : index
    %3 = memref.load %arg5[%c0_5] : memref<1xf32, #tpu.memory_space<smem>>
    %c0_i32 = arith.constant 0 : i32
    %c16_i32 = arith.constant 16 : i32
    %4 = arith.muli %c0_i32, %c16_i32 : i32
    %5 = arith.index_cast %4 : i32 to index
    %c0_6 = arith.constant 0 : index
    %6 = vector.load %arg1[%5, %c0_6] : memref<16x32xf32, #tpu.memory_space<vmem>>, vector<16x32xf32>
    %cst = arith.constant dense<0.000000e+00> : vector<16x128xf32>
    %7 = tpu.matmul %6, %0, %cst {dimension_numbers = #tpu.dot_dimension_numbers<[1], [0], [0], [1], [0, 0, 1, 1], [], []>} : vector<16x32xf32>, vector<32x128xf32>, vector<16x128xf32> -> vector<16x128xf32>
    %8 = vector.broadcast %1 : vector<1x128xf32> to vector<16x128xf32>
    %9 = arith.addf %7, %8 : vector<16x128xf32>
    %cst_7 = arith.constant 0.000000e+00 : f32
    %10 = vector.broadcast %cst_7 : f32 to vector<16x128xf32>
    %11 = arith.maximumf %9, %10 : vector<16x128xf32>
    %12 = vector.extract_strided_slice %11 {offsets = [0, 0], sizes = [16, 8], strides = [1, 1]} : vector<16x128xf32> to vector<16x8xf32>
    %cst_8 = arith.constant dense<0.000000e+00> : vector<1x16xf32>
    %13 = tpu.matmul %2, %12, %cst_8 {dimension_numbers = #tpu.dot_dimension_numbers<[1], [1], [0], [0], [0, 0, 1, 0], [], []>} : vector<1x8xf32>, vector<16x8xf32>, vector<1x16xf32> -> vector<1x16xf32>
    %14 = vector.broadcast %3 : f32 to vector<1x16xf32>
    %15 = arith.addf %13, %14 : vector<1x16xf32>
    %16 = vector.shape_cast %15 : vector<1x16xf32> to vector<1x1x16xf32>
    %c0_9 = arith.constant 0 : index
    %17 = arith.index_cast %c0_i32 : i32 to index
    %c0_10 = arith.constant 0 : index
    %18 = vector.load %arg6[%c0_9, %17, %c0_10] : memref<1x1x16xf32, #tpu.memory_space<vmem>>, vector<1x1x16xf32>
    tpu.vector_store %arg6[%c0_9, %17, %c0_10], %16 {strides = array<i32>} : memref<1x1x16xf32, #tpu.memory_space<vmem>>, vector<1x1x16xf32>,
    %c1_i32 = arith.constant 1 : i32
    return
  }
  func.func @transform_0(%arg0: i32) -> (i32, i32) {
    %c0_i32 = arith.constant 0 : i32
    %c0_i32_0 = arith.constant 0 : i32
    return %arg0, %c0_i32 : i32, i32
  }
  func.func @transform_1(%arg0: i32) -> (i32, i32) {
    %c0_i32 = arith.constant 0 : i32
    %c0_i32_0 = arith.constant 0 : i32
    %c0_i32_1 = arith.constant 0 : i32
    return %c0_i32, %c0_i32_0 : i32, i32
  }
  func.func @transform_2(%arg0: i32) -> (i32, i32) {
    %c0_i32 = arith.constant 0 : i32
    %c0_i32_0 = arith.constant 0 : i32
    %c0_i32_1 = arith.constant 0 : i32
    return %c0_i32, %c0_i32_0 : i32, i32
  }
  func.func @transform_3(%arg0: i32) -> (i32, i32) {
    %c0_i32 = arith.constant 0 : i32
    %c0_i32_0 = arith.constant 0 : i32
    %c0_i32_1 = arith.constant 0 : i32
    return %c0_i32, %c0_i32_0 : i32, i32
  }
  func.func @transform_4(%arg0: i32) -> i32 {
    %c0_i32 = arith.constant 0 : i32
    %c0_i32_0 = arith.constant 0 : i32
    return %c0_i32 : i32
  }
  func.func @transform_5(%arg0: i32) -> (i32, i32, i32) {
    %c0_i32 = arith.constant 0 : i32
    %c0_i32_0 = arith.constant 0 : i32
    %c0_i32_1 = arith.constant 0 : i32
    return %arg0, %c0_i32, %c0_i32_0 : i32, i32, i32
  }
}

</mosaic_0001>

<bundles_post_ra>
// kernel: tpu_custom_call.1
= control target key start
LH: loop header
LB: loop body
LE: loop exit
PB: predicated region body
PF: predicated region fallthrough
CT: control target
= control target key end

     0   :  { %11 = vsyncpa [#allocation4], 0  ;;  %s295_s0 = inlined_call_operand.hbm [shape: f32[16,32], index: 0, kind: input, shape index: {}]   ;;  %s296_s1 = inlined_call_operand.hbm [shape: f32[32,128], index: 1, kind: input, shape index: {}]   ;;  %s297_s2 = inlined_call_operand.vmem [shape: f32[1,128], index: 2, kind: input, shape index: {}]   ;;  %s298_s3 = inlined_call_operand.vmem [shape: f32[1,8], index: 3, kind: input, shape index: {}]   ;;  %s299_s4 = inlined_call_operand.<no memory space> [shape: f32[1], index: 4, kind: input, shape index: {}]   ;;  %s300_s5 = inlined_call_operand.hbm [shape: f32[1,1,16], index: 5, kind: output, shape index: {}]  }
   0x1   :  { %12 = vsyncpa [#allocation7], 0 }
   0x2   :  { %13 = vsyncpa [#allocation5], 0  ;;  %s18_s20 = sshll.u32 %s295_s0, 4  ;;  %s242_s21 = smov [#allocation3]   ;;  %s19_s20 = int_to_ptr.hbm [resolvable:$true] %s18_s20 }
   0x3   :  { %s20_s22 = sshll.u32 %s242_s21, 4  ;;  %s31_s25 = sshll.u32 %s296_s1, 4  ;;  %s21_s22 = int_to_ptr.vmem [resolvable:$true] %s20_s22  ;;  %s32_s25 = int_to_ptr.hbm [resolvable:$true] %s31_s25 }
   0x4   :  { %s243_s26 = smov 128   ;;  %s244_s27 = smov 8  }
   0x5   :  { %26 = dma.hbm_to_vmem [thread:$0]  %s19_s20, 256, %s21_s22, [#allocation4], %s243_s26, %s243_s26, %s244_s27  }
   0x6   :  { %s245_s28 = smov [#allocation6]  }
   0x7   :  { %s33_s29 = sshll.u32 %s245_s28, 4  ;;  %s34_s29 = int_to_ptr.vmem [resolvable:$true] %s33_s29 }
   0x8   :  { %39 = dma.hbm_to_vmem [thread:$0]  %s32_s25, 512, %s34_s29, [#allocation7], %s243_s26, %s243_s26, %s244_s27  }
   0x9   :  { %236 = dma.done.wait [#allocation4], 256  }
   0xa   :  { %237 = vsyncadd [#allocation4], 4294967040 }
   0xb   :  { %238 = dma.done.wait [#allocation7], 512  }
   0xc   :  { %239 = vsyncadd [#allocation7], 4294966784  ;;  %v57_v0 = vld [vmem:[#allocation6 + $0x18] sm:$0xff]  ;;  %v56_v1 = vld [vmem:[#allocation6 + $0x10] sm:$0xff]  ;;  %vm66_vm0 = vcmask 261120   ;;  %vm99_vm1 = vcmask 64512   ;;  %v98_v14 = vstv %s299_s4 }
   0xd   :  { %154 = vmatpush.msra.mxu2 %v57_v0  ;;  %85 = vmatpush.msra.mxu0 %v57_v0  ;;  %v55_v2 = vld [vmem:[#allocation6 + $0x8] sm:$0xff]  ;;  %v54_v3 = vld [vmem:[#allocation6] sm:$0xff]  ;;  %v62_v4 = vld [vmem:[#allocation3 + $0x8] sm:$0xff]  ;;  %s246_s9 = smov [#allocation8]   ;;  %s138_s12 = sshll.u32 %s300_s5, 4  ;;  %vm129_vm2 = vcmask 122880   ;;  %s139_s12 = int_to_ptr.hbm [resolvable:$true] %s138_s12 }
   0xe   :  { %v61_v5 = vld [vmem:[#allocation3] sm:$0xff] }
   0xf   :  { %155 = vmatpush.msra.mxu2 %v56_v1  ;;  %86 = vmatpush.msra.mxu0 %v56_v1  ;;  %v163_v6 = vld [vmem:[%s297_s2] ss:$0 sm:$0xff]  ;;  %s136_s2 = sshll.u32 %s246_s9, 4  ;;  %s137_s2 = int_to_ptr.vmem [resolvable:$true] %s136_s2 }
  0x10   :  { %v59_v13 = vld [vmem:[%s298_s3] sm:$0x1] }
  0x11   :  { %156 = vmatpush.msra.mxu2 %v55_v2  ;;  %87 = vmatpush.msra.mxu0 %v55_v2 }
  0x13   :  { %157 = vmatpush.msra.mxu2 %v54_v3  ;;  %88 = vmatpush.msra.mxu0 %v54_v3 }
  0x14   :  { %150 = vmatmul.msk.f32.vlgmr.msra.gmra.mxu2 %vm66_vm0, %v62_v4  ;;  %149 = vmatmul.msk.f32.vlgmr.msra.gmra.mxu0 %vm66_vm0, %v61_v5 }
  0x91   :  { %v90_v7 = vpop.f32.mrf.mxu0 }
  0x92   :  { %v91_v10 = vadd.f32 %v163_v6, %v90_v7 }
  0x94   :  { %v96_v12 = vmax.f32 %v91_v10, 0.0 }
  0x97   :  { %v93_v8 = vpop.f32.mrf.mxu2 }
  0x98   :  { %v94_v9 = vadd.f32 %v163_v6, %v93_v8 }
  0x9a   :  { %v97_v11 = vmax.f32 %v94_v9, 0.0 }
  0x9c   :  { %151 = vmatpush.xpose.msk.msra.mxu1 %vm99_vm1, %v97_v11 }
  0xa0   :  { %152 = vmatpush.xpose.msk.msra.mxu1 %vm99_vm1, %v96_v12 }
  0xa3   :  { %153 = vmatmul.msk.f32.vlgmr.msra.gmra.mxu1 %vm99_vm1, %v59_v13 }
 0x120   :  { %v126_v15 = vpop.f32.mrf.mxu1 }
 0x121   :  { %v127_v16 = vadd.f32 %v126_v15, %v98_v14 }
 0x123   :  { %130 = vst.msk [vmem:[#allocation8] sm:$0x1] %vm129_vm2, %v127_v16 }
 0x124   :  { %141 = dma.vmem_to_hbm [thread:$0]  %s137_s2, 16, %s139_s12, [#allocation5]  }
 0x125   :  { %240 = dma.done.wait [#allocation5], 16  }
 0x126   :  { %241 = vsyncadd [#allocation5], 4294967280 }
 0x127   :  { %146 = vsyncpa [#allocation4], 1 }
 0x128   :  { %147 = vsyncpa [#allocation7], 1 }
 0x129   :  { %148 = vsyncpa [#allocation5], 1 }

</bundles_post_ra>
